<compile_context>
chip_gen: v7x
topology: tpu7x:2x2x1
jax: 0.10.0
libtpu: 0.0.40
codegen_flags: <defaults>
</compile_context>

<pallas_src>
import functools

import jax
import jax.numpy as jnp
from jax.experimental import pallas as pl
from jax.experimental.pallas import tpu as pltpu


def _round_up(x, m):
    return ((x + m - 1) // m) * m


def _gem_kernel_general(x_ref, p_ref, invp_ref, o_ref, acc_ref, *,
                        eps, hw_total, hw_tile, mask_hw):
    # x_ref: (RT, HT)  p_ref/invp_ref/o_ref/acc_ref: (RT, 1)
    k = pl.program_id(1)

    @pl.when(k == 0)
    def _():
        acc_ref[...] = jnp.zeros_like(acc_ref)

    x = jnp.maximum(x_ref[...], eps)            # clamp(min=eps)
    p = p_ref[...]                              # (RT, 1) -> free lane broadcast
    xp = jnp.power(x, p)                        # per-row exponent
    if mask_hw:
        lane = jax.lax.broadcasted_iota(jnp.int32, x.shape, 1) + k * hw_tile
        xp = jnp.where(lane < hw_total, xp, 0.0)
    acc_ref[...] += jnp.sum(xp, axis=-1, keepdims=True)

    @pl.when(k == pl.num_programs(1) - 1)
    def _():
        m = acc_ref[...] * (1.0 / hw_total)     # full-extent mean
        o_ref[...] = jnp.power(m, invp_ref[...])


def _gem_kernel_int(x_ref, o_ref, acc_ref, *,
                    eps, hw_total, hw_tile, mask_hw, p_int):
    # Static-integer-p fast path: x**p as repeated VPU multiplies (no EUP).
    k = pl.program_id(1)

    @pl.when(k == 0)
    def _():
        acc_ref[...] = jnp.zeros_like(acc_ref)

    x = jnp.maximum(x_ref[...], eps)
    xp = x
    for _ in range(int(p_int) - 1):
        xp = xp * x
    if mask_hw:
        lane = jax.lax.broadcasted_iota(jnp.int32, x.shape, 1) + k * hw_tile
        xp = jnp.where(lane < hw_total, xp, 0.0)
    acc_ref[...] += jnp.sum(xp, axis=-1, keepdims=True)

    @pl.when(k == pl.num_programs(1) - 1)
    def _():
        m = acc_ref[...] * (1.0 / hw_total)
        o_ref[...] = jnp.power(m, jnp.float32(1.0 / p_int))  # tiny tile; pow is cheap here


def gem_forward(x, p, eps=1e-6, *, static_int_p=None):
    """GeM pooling.

    x: (N, C, H, W) float32, p: (C,) float32 -> (N, C, 1, 1) float32.
    If static_int_p is given (e.g. 3, the module default), all channels use
    that integer exponent via the VPU fast path.
    """
    N, C, H, W = x.shape
    HW = H * W
    NC = N * C

    # Row tile: multiple of 8 sublanes, up to 256 rows per step.
    row_tile = min(256, _round_up(NC, 8))
    nc_pad = _round_up(NC, row_tile)

    # HW tile: lane-dense multiple of 128, capped so a double-buffered input
    # tile stays ~<= 8 MiB (safe for v7x's smaller VMEM).
    budget_bytes = 4 << 20
    hw_tile_cap = max(128, (budget_bytes // (row_tile * 4)) // 128 * 128)
    hw_tile = min(_round_up(HW, 128), hw_tile_cap)
    hw_pad = _round_up(HW, hw_tile)
    mask_hw = hw_pad != HW

    x_flat = x.reshape(NC, HW).astype(jnp.float32)
    if nc_pad != NC or hw_pad != HW:
        # Pad with 1.0: harmless (masked / sliced off), never creates inf/nan.
        x_flat = jnp.pad(x_flat, ((0, nc_pad - NC), (0, hw_pad - HW)),
                         constant_values=1.0)

    grid = (nc_pad // row_tile, hw_pad // hw_tile)
    x_spec = pl.BlockSpec((row_tile, hw_tile), lambda r, k: (r, k))
    col_spec = pl.BlockSpec((row_tile, 1), lambda r, k: (r, 0))
    out_spec = pl.BlockSpec((row_tile, 1), lambda r, k: (r, 0))
    scratch = [pltpu.VMEM((row_tile, 1), jnp.float32)]
    cparams = pltpu.CompilerParams(
        dimension_semantics=("parallel", "arbitrary"))

    if static_int_p is not None:
        kernel = functools.partial(
            _gem_kernel_int, eps=eps, hw_total=HW, hw_tile=hw_tile,
            mask_hw=mask_hw, p_int=int(static_int_p))
        out = pl.pallas_call(
            kernel,
            out_shape=jax.ShapeDtypeStruct((nc_pad, 1), jnp.float32),
            grid=grid,
            in_specs=[x_spec],
            out_specs=out_spec,
            scratch_shapes=scratch,
            compiler_params=cparams,
        )(x_flat)
    else:
        # Per-row p column (sublane axis matches x rows); 1/p hoisted here.
        p_rows = jnp.tile(p.astype(jnp.float32), N)          # (N*C,)
        if nc_pad != NC:
            p_rows = jnp.pad(p_rows, (0, nc_pad - NC), constant_values=1.0)
        p_col = p_rows.reshape(nc_pad, 1)
        invp_col = (1.0 / p_rows).reshape(nc_pad, 1)
        kernel = functools.partial(
            _gem_kernel_general, eps=eps, hw_total=HW, hw_tile=hw_tile,
            mask_hw=mask_hw)
        out = pl.pallas_call(
            kernel,
            out_shape=jax.ShapeDtypeStruct((nc_pad, 1), jnp.float32),
            grid=grid,
            in_specs=[x_spec, col_spec, col_spec],
            out_specs=out_spec,
            scratch_shapes=scratch,
            compiler_params=cparams,
        )(x_flat, p_col, invp_col)

    return out[:NC].reshape(N, C, 1, 1)


def gem_reference(x, p, eps=1e-6):
    xc = jnp.maximum(x, eps)
    xp = jnp.power(xc, p[None, :, None, None])
    m = jnp.mean(xp, axis=(-2, -1), keepdims=True)
    return jnp.power(m, 1.0 / p[None, :, None, None])


if __name__ == "__main__":
    key = jax.random.PRNGKey(0)

    # Primary case: matches GeM.__init__ defaults (p filled with 3).
    N, C, H, W = 2, 4, 16, 16
    x = jax.random.uniform(key, (N, C, H, W), dtype=jnp.float32,
                           minval=-0.5, maxval=2.0)
    p = jnp.full((C,), 3.0, dtype=jnp.float32)
    ref = gem_reference(x, p, eps=1e-6)

    # General per-channel (traced p) path.
    out_gen = jax.block_until_ready(gem_forward(x, p, eps=1e-6))
    assert out_gen.shape == (N, C, 1, 1)
    assert jnp.allclose(out_gen, ref, rtol=1e-5, atol=1e-5)

    # Static integer-p VPU fast path (module default p=3).
    out_fast = jax.block_until_ready(gem_forward(x, p, eps=1e-6,
                                                 static_int_p=3))
    assert jnp.allclose(out_fast, ref, rtol=1e-5, atol=1e-5)

    # Secondary case exercising row padding + HW-lane masking (odd shapes).
    key2 = jax.random.PRNGKey(1)
    N2, C2, H2, W2 = 2, 5, 13, 13
    x2 = jax.random.uniform(key2, (N2, C2, H2, W2), dtype=jnp.float32,
                            minval=-0.5, maxval=2.0)
    p2 = jnp.linspace(2.0, 4.0, C2).astype(jnp.float32)
    out2 = jax.block_until_ready(gem_forward(x2, p2, eps=1e-6))
    ref2 = gem_reference(x2, p2, eps=1e-6)
    assert out2.shape == (N2, C2, 1, 1)
    assert jnp.allclose(out2, ref2, rtol=1e-5, atol=1e-5)

    print("KERNEL_OK")
</pallas_src>

<mosaic_0001>
module attributes {stable_mosaic.version = 11 : i64} {
  func.func @_gem_kernel_general(%arg0: i32, %arg1: i32, %arg2: memref<8x256xf32, #tpu.memory_space<vmem>>, %arg3: memref<8x1xf32, #tpu.memory_space<vmem>>, %arg4: memref<8x1xf32, #tpu.memory_space<vmem>>, %arg5: memref<8x1xf32, #tpu.memory_space<vmem>>, %arg6: memref<8x1xf32, #tpu.memory_space<vmem>>) attributes {dimension_semantics = [#tpu.dimension_semantics<parallel>, #tpu.dimension_semantics<arbitrary>], iteration_bounds = array<i64: 1, 1>, scalar_prefetch = 0 : i64, scratch_operands = 1 : i64, tpu.core_type = #tpu.core_type<tc>, window_params = [{transform_indices = @transform_0, window_bounds = array<i64: 8, 256>}, {transform_indices = @transform_1, window_bounds = array<i64: 8, 1>}, {transform_indices = @transform_2, window_bounds = array<i64: 8, 1>}, {transform_indices = @transform_3, window_bounds = array<i64: 8, 1>}]} {
    %c0_i32 = arith.constant 0 : i32
    %0 = arith.cmpi eq, %arg1, %c0_i32 : i32
    %1 = arith.extui %0 : i1 to i32
    %c0_i32_0 = arith.constant 0 : i32
    %2 = arith.cmpi ne, %1, %c0_i32_0 : i32
    scf.if %2 {
      %cst_11 = arith.constant 0.000000e+00 : f32
      %17 = vector.broadcast %cst_11 : f32 to vector<8x1xf32>
      %c0_12 = arith.constant 0 : index
      %c0_13 = arith.constant 0 : index
      %18 = vector.load %arg6[%c0_12, %c0_13] : memref<8x1xf32, #tpu.memory_space<vmem>>, vector<8x1xf32>
      tpu.vector_store %arg6[%c0_12, %c0_13], %17 {strides = array<i32>} : memref<8x1xf32, #tpu.memory_space<vmem>>, vector<8x1xf32>,
    } else {
    }
    %c0 = arith.constant 0 : index
    %c0_1 = arith.constant 0 : index
    %3 = vector.load %arg2[%c0, %c0_1] : memref<8x256xf32, #tpu.memory_space<vmem>>, vector<8x256xf32>
    %cst = arith.constant 9.99999997E-7 : f32
    %4 = vector.broadcast %cst : f32 to vector<8x256xf32>
    %5 = arith.maximumf %3, %4 : vector<8x256xf32>
    %c0_2 = arith.constant 0 : index
    %c0_3 = arith.constant 0 : index
    %6 = vector.load %arg3[%c0_2, %c0_3] : memref<8x1xf32, #tpu.memory_space<vmem>>, vector<8x1xf32>
    %7 = vector.broadcast %6 : vector<8x1xf32> to vector<8x256xf32>
    %8 = math.powf %5, %7 : vector<8x256xf32>
    %c0_4 = arith.constant 0 : index
    %c0_5 = arith.constant 0 : index
    %9 = vector.load %arg6[%c0_4, %c0_5] : memref<8x1xf32, #tpu.memory_space<vmem>>, vector<8x1xf32>
    %cst_6 = arith.constant dense<0.000000e+00> : vector<8xf32>
    %10 = vector.multi_reduction <add>, %8, %cst_6 [1] : vector<8x256xf32> to vector<8xf32>
    %11 = vector.shape_cast %10 : vector<8xf32> to vector<8x1xf32>
    %12 = arith.addf %9, %11 : vector<8x1xf32>
    %c0_7 = arith.constant 0 : index
    %c0_8 = arith.constant 0 : index
    %13 = vector.load %arg6[%c0_7, %c0_8] : memref<8x1xf32, #tpu.memory_space<vmem>>, vector<8x1xf32>
    tpu.vector_store %arg6[%c0_7, %c0_8], %12 {strides = array<i32>} : memref<8x1xf32, #tpu.memory_space<vmem>>, vector<8x1xf32>,
    %c0_i32_9 = arith.constant 0 : i32
    %14 = arith.cmpi eq, %arg1, %c0_i32_9 : i32
    %15 = arith.extui %14 : i1 to i32
    %c0_i32_10 = arith.constant 0 : i32
    %16 = arith.cmpi ne, %15, %c0_i32_10 : i32
    scf.if %16 {
      %c0_11 = arith.constant 0 : index
      %c0_12 = arith.constant 0 : index
      %17 = vector.load %arg6[%c0_11, %c0_12] : memref<8x1xf32, #tpu.memory_space<vmem>>, vector<8x1xf32>
      %cst_13 = arith.constant 3.906250e-03 : f32
      %18 = vector.broadcast %cst_13 : f32 to vector<8x1xf32>
      %19 = arith.mulf %17, %18 : vector<8x1xf32>
      %c0_14 = arith.constant 0 : index
      %c0_15 = arith.constant 0 : index
      %20 = vector.load %arg4[%c0_14, %c0_15] : memref<8x1xf32, #tpu.memory_space<vmem>>, vector<8x1xf32>
      %21 = math.powf %19, %20 : vector<8x1xf32>
      %c0_16 = arith.constant 0 : index
      %c0_17 = arith.constant 0 : index
      %22 = vector.load %arg5[%c0_16, %c0_17] : memref<8x1xf32, #tpu.memory_space<vmem>>, vector<8x1xf32>
      tpu.vector_store %arg5[%c0_16, %c0_17], %21 {strides = array<i32>} : memref<8x1xf32, #tpu.memory_space<vmem>>, vector<8x1xf32>,
    } else {
    }
    return
  }
  func.func @transform_0(%arg0: i32, %arg1: i32) -> (i32, i32) {
    %c0_i32 = arith.constant 0 : i32
    return %arg0, %arg1 : i32, i32
  }
  func.func @transform_1(%arg0: i32, %arg1: i32) -> (i32, i32) {
    %c0_i32 = arith.constant 0 : i32
    %c0_i32_0 = arith.constant 0 : i32
    return %arg0, %c0_i32 : i32, i32
  }
  func.func @transform_2(%arg0: i32, %arg1: i32) -> (i32, i32) {
    %c0_i32 = arith.constant 0 : i32
    %c0_i32_0 = arith.constant 0 : i32
    return %arg0, %c0_i32 : i32, i32
  }
  func.func @transform_3(%arg0: i32, %arg1: i32) -> (i32, i32) {
    %c0_i32 = arith.constant 0 : i32
    %c0_i32_0 = arith.constant 0 : i32
    return %arg0, %c0_i32 : i32, i32
  }
}

</mosaic_0001>

<bundles_post_ra>
// kernel: tpu_custom_call.1
= control target key start
LH: loop header
LB: loop body
LE: loop exit
PB: predicated region body
PF: predicated region fallthrough
CT: control target
= control target key end

     0   :  { %v223_v0 = vmov 0   ;;  %vm457_vm0 = vcmask 7168   ;;  %v224_v2 = vmov 0.0   ;;  %v225_v24 = vmov 2139095040   ;;  %s453_s1 = inlined_call_operand.vmem [shape: f32[8,1], index: 1, kind: input, shape index: {}]   ;;  %s454_s0 = inlined_call_operand.vmem [shape: f32[8,256], index: 0, kind: input, shape index: {}]   ;;  %s455_s2 = inlined_call_operand.vmem [shape: f32[8,1], index: 2, kind: input, shape index: {}]   ;;  %s456_s3 = inlined_call_operand.vmem [shape: f32[8,1], index: 3, kind: output, shape index: {}]  }
   0x1   :  { %210 = vset.pattern.permute.xlu0 %v223_v0  ;;  %v24_v1 = vld [vmem:[%s453_s1] sm:$0xff]  ;;  %19 = vst.msk [vmem:[#allocation2] sm:$0xff] %vm457_vm0, %v224_v2  ;;  %v21_v4 = vld [vmem:[%s454_s0 + $0x8] sm:$0xff] }
   0x2   :  { %27 = vperm.xlu0 %210, %v24_v1   ;;  %v20_v3 = vld [vmem:[%s454_s0] sm:$0xff]  ;;  %v259_v6 = vmax.f32 %v21_v4, 1e-06 }
   0x3   :  { %v257_v5 = vmax.f32 %v20_v3, 1e-06  ;;  %v44_v61 = vld [vmem:[%s455_s2] sm:$0xff] }
   0x4   :  { %v265_v8 = vand.u32 2147483647, %v259_v6  ;;  %v159_v1 = vand.u32 2147483647, %v44_v61  ;;  %v164_v4 = vtrunc.f32 %v44_v61 }
   0x5   :  { %v262_v7 = vand.u32 2147483647, %v257_v5  ;;  %vm72_vm1 = vcmp.eq.f32.partialorder %v257_v5, 0  ;;  %vm458_vm7 = vcmp.lt.f32.partialorder %v257_v5, 0  ;;  %vm74_vm15 = vcmp.lt.s32.totalorder %v257_v5, 0 }
   0x6   :  { %v168_v3 = vtrunc.f32 %v159_v1 }
   0x7   :  { %211 = vlog2.f32 %v262_v7  ;;  %vm75_vm5 = vcmp.gt.f32.partialorder %v262_v7, 1065353216 }
   0x8   :  { %213 = vlog2.f32 %v265_v8  ;;  %v32_v58 = vld [vmem:[#allocation2] sm:$0xff] }
  0x11   :  { %v212_v9 = vpop.eup %211 }
  0x12   :  { %v214_v10 = vpop.eup %213 }
  0x81   :  { %v269_v11 = vpop.permute.xlu0 %27 }
  0x82   :  { %v53_v12 = vmul.f32 %v212_v9, %v269_v11  ;;  %v273_v13 = vand.u32 2147483647, %v269_v11  ;;  %v60_v14 = vtrunc.f32 %v269_v11  ;;  %v105_v15 = vmul.f32 %v214_v10, %v269_v11 }
  0x83   :  { %vm59_vm3 = vcmp.lt.f32.partialorder %v269_v11, 0  ;;  %vm57_vm0 = vcmp.eq.f32.partialorder %v269_v11, 0 }
  0x84   :  { %215 = vpow2.f32 %v53_v12  ;;  %vm459_vm2 = vcmp.eq.f32.partialorder %v273_v13, 2139095040  ;;  %v64_v16 = vtrunc.f32 %v273_v13  ;;  %vm61_vm4 = vcmp.ne.f32.partialorder %v269_v11, %v60_v14  ;;  %vm294_vm8 = vmand %vm59_vm3, %vm72_vm1 }
  0x85   :  { %217 = vpow2.f32 %v105_v15  ;;  %vm285_vm6 = vmor %vm61_vm4, %vm459_vm2  ;;  %vm63_vm13 = vcmp.lt.f32.partialorder %v273_v13, 1266679808  ;;  %v91_v25 = vsel %vm59_vm3, 0, %v225_v24  ;;  %vm127_vm2 = vcmp.gt.f32.partialorder %v265_v8, 1065353216 }
  0x86   :  { %v65_v18 = vcvt.f32.s32 %v64_v16  ;;  %vm300_vm9 = vmxor %vm59_vm3, %vm75_vm5  ;;  %vm460_vm5 = vcmp.lt.f32.partialorder %v259_v6, 0  ;;  %v79_v30 = vsel %vm59_vm3, 2139095040, %v223_v0  ;;  %v92_v31 = vxor.u32 2147483648, %v91_v25 }
  0x87   :  { %vm68_vm10 = vmneg %vm285_vm6 }
  0x88   :  { %v66_v20 = vand.u32 1, %v65_v18  ;;  %vm310_vm12 = vmand %vm458_vm7, %vm285_vm6  ;;  %vm96_vm7 = vcmp.ne.f32.partialorder %v257_v5, %v257_v5 }
  0x8a   :  { %vm67_vm11 = vcmp.eq.s32.totalorder %v66_v20, 1 }
  0x8b   :  { %vm69_vm14 = vmand %vm67_vm11, %vm68_vm10  ;;  %vm124_vm11 = vcmp.eq.f32.partialorder %v259_v6, 0 }
  0x8c   :  { %vm316_vm4 = vmand %vm63_vm13, %vm69_vm14  ;;  %vm88_vm14 = vcmp.eq.f32.partialorder %v257_v5, 3212836864 }
  0x8d   :  { %vm86_vm10 = vmor %vm294_vm8, %vm300_vm9  ;;  %vm126_vm8 = vcmp.lt.s32.totalorder %v259_v6, 0  ;;  %v93_v37 = vsel %vm316_vm4, %v92_v31, %v91_v25 }
  0x8e   :  { %v216_v26 = vpop.eup %215  ;;  %vm332_vm13 = vmand %vm74_vm15, %vm316_vm4  ;;  %v87_v33 = vsel %vm86_vm10, 2139095040, %v223_v0  ;;  %vm140_vm15 = vcmp.eq.f32.partialorder %v259_v6, 3212836864  ;;  %vm97_vm10 = vcmp.ne.f32.partialorder %v269_v11, %v269_v11 }
  0x8f   :  { %v218_v28 = vpop.eup %217  ;;  %v78_v29 = vsel %vm310_vm12, 2143289344, %v216_v26  ;;  %vm129_vm9 = vmand %vm460_vm5, %vm285_vm6  ;;  %vm76_vm6 = vcmp.eq.f32.partialorder %v262_v7, 2139095040  ;;  %vm148_vm5 = vcmp.ne.f32.partialorder %v259_v6, %v259_v6  ;;  %v89_v41 = vsel %vm88_vm14, 1065353216, %v87_v33 }
  0x90   :  { %v80_v32 = vsel %vm72_vm1, %v79_v30, %v78_v29  ;;  %v130_v34 = vsel %vm129_vm9, 2143289344, %v218_v28  ;;  %vm358_vm12 = vmand %vm59_vm3, %vm124_vm11 }
  0x91   :  { %v82_v36 = vxor.u32 2147483648, %v80_v32  ;;  %v132_v38 = vsel %vm124_vm11, %v79_v30, %v130_v34  ;;  %vm137_vm1 = vmxor %vm59_vm3, %vm127_vm2  ;;  %vm128_vm2 = vcmp.eq.f32.partialorder %v265_v8, 2139095040  ;;  %vm475_vm11 = vcmp.eq.f32.partialorder %v273_v13, 2139095040 }
  0x92   :  { %v134_v39 = vxor.u32 2147483648, %v132_v38  ;;  %vm138_vm9 = vmor %vm358_vm12, %vm137_vm1  ;;  %vm476_vm12 = vcmp.lt.f32.partialorder %v257_v5, 0  ;;  %vm479_vm1 = vcmp.lt.f32.partialorder %v259_v6, 0 }
  0x93   :  { %v83_v40 = vsel %vm332_vm13, %v82_v36, %v80_v32  ;;  %vm133_vm3 = vmand %vm126_vm8, %vm316_vm4  ;;  %v139_v42 = vsel %vm138_vm9, 2139095040, %v223_v0  ;;  %v94_v44 = vsel %vm476_vm12, %v93_v37, %v91_v25  ;;  %vm477_vm13 = vcmp.eq.f32.partialorder %v257_v5, 1065353216 }
  0x94   :  { %v90_v43 = vsel %vm475_vm11, %v89_v41, %v83_v40  ;;  %vm100_vm14 = vmor %vm477_vm13, %vm57_vm0  ;;  %v135_v45 = vsel %vm133_vm3, %v134_v39, %v132_v38  ;;  %v141_v46 = vsel %vm140_vm15, 1065353216, %v139_v42  ;;  %v146_v49 = vsel %vm479_vm1, %v93_v37, %v91_v25 }
  0x95   :  { %v95_v47 = vsel %vm76_vm6, %v94_v44, %v90_v43  ;;  %vm98_vm4 = vmor %vm96_vm7, %vm97_vm10  ;;  %vm58_vm6 = vcmp.eq.f32.partialorder %v269_v11, 1065353216  ;;  %vm480_vm7 = vcmp.eq.f32.partialorder %v259_v6, 1065353216  ;;  %vm163_vm12 = vcmp.lt.f32.partialorder %v44_v61, 0 }
  0x96   :  { %vm478_vm8 = vmmov %vm475_vm11  ;;  %v99_v50 = vsel %vm98_vm4, 2143289344, %v95_v47  ;;  %v195_v10 = vsel %vm163_vm12, 0, %v225_v24  ;;  %v183_v12 = vsel %vm163_vm12, 2139095040, %v223_v0 }
  0x97   :  { %v142_v48 = vsel %vm478_vm8, %v141_v46, %v135_v45  ;;  %vm150_vm15 = vmor %vm148_vm5, %vm97_vm10  ;;  %v101_v52 = vsel %vm100_vm14, 1065353216, %v99_v50  ;;  %vm481_vm5 = vcmask 7168   ;;  %vm165_vm10 = vcmp.ne.f32.partialorder %v44_v61, %v164_v4 }
  0x98   :  { %v147_v51 = vsel %vm128_vm2, %v146_v49, %v142_v48  ;;  %vm152_vm9 = vmor %vm480_vm7, %vm57_vm0  ;;  %v102_v54 = vsel %vm58_vm6, %v257_v5, %v101_v52  ;;  %v169_v5 = vcvt.f32.s32 %v168_v3  ;;  %vm160_vm0 = vcmp.eq.f32.partialorder %v159_v1, 2139095040 }
  0x99   :  { %v151_v53 = vsel %vm150_vm15, 2143289344, %v147_v51  ;;  %vm427_vm2 = vmor %vm165_vm10, %vm160_vm0  ;;  %vm167_vm14 = vcmp.lt.f32.partialorder %v159_v1, 1266679808  ;;  %v196_v13 = vxor.u32 2147483648, %v195_v10 }
  0x9a   :  { %v153_v55 = vsel %vm152_vm9, 1065353216, %v151_v53  ;;  %v170_v7 = vand.u32 1, %v169_v5  ;;  %vm172_vm11 = vmneg %vm427_vm2 }
  0x9b   :  { %v154_v56 = vsel %vm58_vm6, %v259_v6, %v153_v55 }
  0x9c   :  { %v33_v57 = vadd.f32 %v154_v56, %v102_v54  ;;  %vm171_vm3 = vcmp.eq.s32.totalorder %v170_v7, 1 }
  0x9d   :  { %vm173_vm4 = vmand %vm171_vm3, %vm172_vm11  ;;  %vm201_vm3 = vcmp.ne.f32.partialorder %v44_v61, %v44_v61 }
  0x9e   :  { %34 = vadd.xlane.f32.xlu0 %v33_v57  ;;  %vm434_vm15 = vmand %vm167_vm14, %vm173_vm4  ;;  %vm161_vm14 = vcmp.eq.f32.partialorder %v44_v61, 0 }
  0x9f   :  { %v197_v18 = vsel %vm434_vm15, %v196_v13, %v195_v10 }
 0x12b   :  { %v35_v59 = vpop.xlane.xlu0 %34 }
 0x12c   :  { %v36_v60 = vadd.f32 %v35_v59, %v32_v58 }
 0x12e   :  { %38 = vst.msk [vmem:[#allocation2] sm:$0xff] %vm481_vm5, %v36_v60 }
 0x135   :  { %v42_v62 = vld [vmem:[#allocation2] sm:$0xff] }
 0x136   :  { %v43_v63 = vmul.f32 0.00390625, %v42_v62 }
 0x138   :  { %v155_v2 = vand.u32 2147483647, %v43_v63  ;;  %vm176_vm8 = vcmp.eq.f32.partialorder %v43_v63, 0  ;;  %vm175_vm6 = vcmp.lt.f32.partialorder %v43_v63, 0  ;;  %vm178_vm10 = vcmp.lt.s32.totalorder %v43_v63, 0 }
 0x139   :  { %vm188_vm7 = vmand %vm163_vm12, %vm176_vm8  ;;  %vm177_vm4 = vcmp.eq.f32.partialorder %v43_v63, 1065353216  ;;  %v198_v23 = vsel %vm175_vm6, %v197_v18, %v195_v10 }
 0x13a   :  { %219 = vlog2.f32 %v155_v2  ;;  %vm179_vm13 = vcmp.gt.f32.partialorder %v155_v2, 1065353216  ;;  %vm181_vm5 = vmand %vm175_vm6, %vm427_vm2  ;;  %vm180_vm2 = vcmp.eq.f32.partialorder %v155_v2, 2139095040 }
 0x13b   :  { %vm189_vm1 = vmxor %vm163_vm12, %vm179_vm13  ;;  %vm192_vm12 = vcmp.eq.f32.partialorder %v43_v63, 3212836864  ;;  %vm200_vm13 = vcmp.ne.f32.partialorder %v43_v63, %v43_v63 }
 0x13c   :  { %vm190_vm9 = vmor %vm188_vm7, %vm189_vm1 }
 0x13d   :  { %v191_v17 = vsel %vm190_vm9, 2139095040, %v223_v0  ;;  %vm185_vm11 = vmand %vm178_vm10, %vm434_vm15  ;;  %vm486_vm9 = vcmask 7168  }
 0x13e   :  { %v193_v21 = vsel %vm192_vm12, 1065353216, %v191_v17  ;;  %vm202_vm1 = vmor %vm200_vm13, %vm201_vm3 }
 0x13f   :  { %vm204_vm7 = vmor %vm177_vm4, %vm161_vm14 }
 0x144   :  { %v220_v6 = vpop.eup %219 }
 0x145   :  { %v157_v9 = vmul.f32 %v220_v6, %v44_v61 }
 0x147   :  { %221 = vpow2.f32 %v157_v9 }
 0x151   :  { %v222_v14 = vpop.eup %221 }
 0x152   :  { %v182_v15 = vsel %vm181_vm5, 2143289344, %v222_v14 }
 0x153   :  { %v184_v16 = vsel %vm176_vm8, %v183_v12, %v182_v15  ;;  %vm162_vm8 = vcmp.eq.f32.partialorder %v44_v61, 1065353216 }
 0x154   :  { %v186_v19 = vxor.u32 2147483648, %v184_v16 }
 0x156   :  { %v187_v20 = vsel %vm185_vm11, %v186_v19, %v184_v16 }
 0x157   :  { %v194_v22 = vsel %vm160_vm0, %v193_v21, %v187_v20 }
 0x158   :  { %v199_v0 = vsel %vm180_vm2, %v198_v23, %v194_v22 }
 0x159   :  { %v203_v24 = vsel %vm202_vm1, 2143289344, %v199_v0 }
 0x15a   :  { %v205_v25 = vsel %vm204_vm7, 1065353216, %v203_v24 }
 0x15b   :  { %v206_v26 = vsel %vm162_vm8, %v43_v63, %v205_v25 }
 0x15c   :  { %46 = vst.msk [vmem:[%s456_s3] sm:$0xff] %vm486_vm9, %v206_v26 }

</bundles_post_ra>
